<compile_context>
chip_gen: v6e
topology: v6e:2x2x1
jax: 0.10.0
libtpu: 0.0.40
codegen_flags: <defaults>
</compile_context>

<pallas_src>
import functools

import jax
import jax.numpy as jnp
from jax.experimental import pallas as pl
from jax.experimental.pallas import tpu as pltpu


def _round_up(x, m):
    return ((x + m - 1) // m) * m


# ----------------------------------------------------------------------------
# Pallas kernel: fused activation + masked dice partial sums per batch element
# ----------------------------------------------------------------------------
def _dice_partial_kernel(activation, hw, tp,
                         pred_ref, gt_ref,
                         inter_ref, psum_ref, gsum_ref,
                         acc_i, acc_p, acc_g):
    j = pl.program_id(1)

    # Reset accumulators at the start of each batch element's pixel loop.
    @pl.when(j == 0)
    def _():
        acc_i[...] = jnp.zeros_like(acc_i)
        acc_p[...] = jnp.zeros_like(acc_p)
        acc_g[...] = jnp.zeros_like(acc_g)

    x = pred_ref[...].astype(jnp.float32)          # (C, tp)
    g = gt_ref[...].astype(jnp.float32)            # (C, tp)

    ragged = (hw % tp) != 0                        # static python bool
    if ragged:
        col = jax.lax.broadcasted_iota(jnp.int32, x.shape, 1) + j * tp
        valid = col < hw
        # Select (not multiply) BEFORE any transcendental so OOB garbage
        # (possibly NaN bits) cannot poison the accumulators.
        x = jnp.where(valid, x, 0.0)
        g = jnp.where(valid, g, 0.0)

    if activation == "sigmoid":
        # Manual sigmoid (exp + exact reciprocal); numerically matches nn.Sigmoid.
        a = 1.0 / (1.0 + jnp.exp(-x))
    elif activation == "softmax2d":
        # Channel softmax per pixel: channels live on the sublane axis.
        m = jnp.max(x, axis=0, keepdims=True)
        e = jnp.exp(x - m)
        s = jnp.sum(e, axis=0, keepdims=True)
        a = e * pl.reciprocal(s, approx=True)      # EUP, no f32 divide
    else:  # 'none'
        a = x

    if ragged:
        a = jnp.where(valid, a, 0.0)

    # Per-step work stays on the VPU: elementwise multiply + adds.
    acc_i[...] += a * g
    acc_p[...] += a
    acc_g[...] += g

    # Epilogue: single cross-sublane + cross-lane reduce, store once per batch.
    @pl.when(j == pl.num_programs(1) - 1)
    def _():
        def lanes(v):                              # (C, tp) -> (1, 128) splat of the sum
            s = jnp.sum(v, axis=0, keepdims=True)  # (1, tp)
            s = jnp.sum(s, axis=1, keepdims=True)  # (1, 1)
            return jnp.broadcast_to(s, (1, 128))

        inter_ref[...] = lanes(acc_i[...])
        psum_ref[...] = lanes(acc_p[...])
        gsum_ref[...] = lanes(acc_g[...])


# ----------------------------------------------------------------------------
# Wrapper
# ----------------------------------------------------------------------------
def _choose_tile(c, hw, requested):
    tp = max(128, (int(requested) // 128) * 128)
    tp = min(tp, _round_up(hw, 128))
    # Keep 2 inputs x 2 double-buffers + 3 f32 scratch under ~8 MiB of VMEM
    # (safe on v5e/v6e 128 MiB and v7x 64 MiB / 32 MiB scoped default).
    vmem_budget = 8 * 1024 * 1024
    bytes_per_lane = (2 * 2 + 3) * c * 4
    cap = max(128, (vmem_budget // bytes_per_lane) // 128 * 128)
    return max(128, min(tp, cap))


def dice_coeff(pred, gt, *, activation="sigmoid", smooth=1e-5, tile_pixels=4096):
    """JAX/Pallas equivalent of diceCoeff(activation=...).forward(pred, gt, smooth)."""
    if activation not in (None, "none", "sigmoid", "softmax2d"):
        raise NotImplementedError("Activation implemented for sigmoid and softmax2d")
    act = "none" if activation is None else activation

    n = int(pred.shape[0])
    if pred.ndim >= 3:
        c = int(pred.shape[1])
        hw = 1
        for d in pred.shape[2:]:
            hw *= int(d)
    else:
        c, hw = 1, int(pred.shape[1])

    # Free (contiguous) reshapes -- no transpose / pad HBM passes.
    x = pred.astype(jnp.float32).reshape(n, c, hw)
    g = gt.astype(jnp.float32).reshape(n, c, hw)

    tp = _choose_tile(c, hw, tile_pixels)
    grid = (n, pl.cdiv(hw, tp))

    kern = functools.partial(_dice_partial_kernel, act, hw, tp)
    row = jax.ShapeDtypeStruct((n, 1, 128), jnp.float32)
    vec_spec = pl.BlockSpec((pl.Squeezed(), c, tp), lambda b, j: (b, 0, j))
    out_spec = pl.BlockSpec((pl.Squeezed(), 1, 128), lambda b, j: (b, 0, 0))

    inter, psum, gsum = pl.pallas_call(
        kern,
        out_shape=(row, row, row),
        grid_spec=pltpu.PrefetchScalarGridSpec(
            num_scalar_prefetch=0,
            grid=grid,
            in_specs=[vec_spec, vec_spec],
            out_specs=(out_spec, out_spec, out_spec),
            scratch_shapes=[pltpu.VMEM((c, tp), jnp.float32)] * 3,
        ),
        compiler_params=pltpu.CompilerParams(
            dimension_semantics=("parallel", "arbitrary")),
    )(x, g)

    inter = inter[:, 0, 0]                                 # (N,)
    union = psum[:, 0, 0] + gsum[:, 0, 0]                  # (N,)
    dice = (2.0 * inter + smooth) / (union + smooth)       # smooth guards 0/0
    return jnp.sum(dice) / n


# ----------------------------------------------------------------------------
# Pure-JAX reference (mirrors the PyTorch module) for validation
# ----------------------------------------------------------------------------
def _dice_ref(pred, gt, activation, smooth):
    if activation == "sigmoid":
        a = jax.nn.sigmoid(pred)
    elif activation == "softmax2d":
        a = jax.nn.softmax(pred, axis=1)
    else:
        a = pred
    n = pred.shape[0]
    pf = a.reshape(n, -1)
    gf = gt.reshape(n, -1)
    inter = jnp.sum(pf * gf, axis=1)
    union = jnp.sum(pf, axis=1) + jnp.sum(gf, axis=1)
    dice = (2.0 * inter + smooth) / (union + smooth)
    return jnp.sum(dice) / n


if __name__ == "__main__":
    key = jax.random.PRNGKey(0)
    kp, kg = jax.random.split(key)
    n, c, h, w = 2, 4, 16, 16
    pred = jax.random.normal(kp, (n, c, h, w), jnp.float32)
    gt = jax.random.bernoulli(kg, 0.5, (n, c, h, w)).astype(jnp.float32)

    loss = dice_coeff(pred, gt, activation="sigmoid", smooth=1e-5)
    loss = jax.block_until_ready(loss)

    ref = jax.block_until_ready(_dice_ref(pred, gt, "sigmoid", 1e-5))
    assert jnp.allclose(loss, ref, rtol=1e-4, atol=1e-5), (float(loss), float(ref))

    print("KERNEL_OK")
</pallas_src>

<mosaic_0001>
module attributes {stable_mosaic.version = 11 : i64} {
  func.func @_dice_partial_kernel(%arg0: i32, %arg1: i32, %arg2: memref<1x4x256xf32, #tpu.memory_space<vmem>>, %arg3: memref<1x4x256xf32, #tpu.memory_space<vmem>>, %arg4: memref<1x1x128xf32, #tpu.memory_space<vmem>>, %arg5: memref<1x1x128xf32, #tpu.memory_space<vmem>>, %arg6: memref<1x1x128xf32, #tpu.memory_space<vmem>>, %arg7: memref<4x256xf32, #tpu.memory_space<vmem>>, %arg8: memref<4x256xf32, #tpu.memory_space<vmem>>, %arg9: memref<4x256xf32, #tpu.memory_space<vmem>>) attributes {dimension_semantics = [#tpu.dimension_semantics<parallel>, #tpu.dimension_semantics<arbitrary>], iteration_bounds = array<i64: 2, 1>, scalar_prefetch = 0 : i64, scratch_operands = 3 : i64, tpu.core_type = #tpu.core_type<tc>, window_params = [{transform_indices = @transform_0, window_bounds = array<i64: 1, 4, 256>}, {transform_indices = @transform_1, window_bounds = array<i64: 1, 4, 256>}, {transform_indices = @transform_2, window_bounds = array<i64: 1, 1, 128>}, {transform_indices = @transform_3, window_bounds = array<i64: 1, 1, 128>}, {transform_indices = @transform_4, window_bounds = array<i64: 1, 1, 128>}]} {
    %c0_i32 = arith.constant 0 : i32
    %0 = arith.cmpi eq, %arg1, %c0_i32 : i32
    %1 = arith.extui %0 : i1 to i32
    %c0_i32_0 = arith.constant 0 : i32
    %2 = arith.cmpi ne, %1, %c0_i32_0 : i32
    scf.if %2 {
      %cst_22 = arith.constant 0.000000e+00 : f32
      %27 = vector.broadcast %cst_22 : f32 to vector<4x256xf32>
      %c0_23 = arith.constant 0 : index
      %c0_24 = arith.constant 0 : index
      %28 = vector.load %arg7[%c0_23, %c0_24] : memref<4x256xf32, #tpu.memory_space<vmem>>, vector<4x256xf32>
      tpu.vector_store %arg7[%c0_23, %c0_24], %27 {strides = array<i32>} : memref<4x256xf32, #tpu.memory_space<vmem>>, vector<4x256xf32>,
      %cst_25 = arith.constant 0.000000e+00 : f32
      %29 = vector.broadcast %cst_25 : f32 to vector<4x256xf32>
      %c0_26 = arith.constant 0 : index
      %c0_27 = arith.constant 0 : index
      %30 = vector.load %arg8[%c0_26, %c0_27] : memref<4x256xf32, #tpu.memory_space<vmem>>, vector<4x256xf32>
      tpu.vector_store %arg8[%c0_26, %c0_27], %29 {strides = array<i32>} : memref<4x256xf32, #tpu.memory_space<vmem>>, vector<4x256xf32>,
      %cst_28 = arith.constant 0.000000e+00 : f32
      %31 = vector.broadcast %cst_28 : f32 to vector<4x256xf32>
      %c0_29 = arith.constant 0 : index
      %c0_30 = arith.constant 0 : index
      %32 = vector.load %arg9[%c0_29, %c0_30] : memref<4x256xf32, #tpu.memory_space<vmem>>, vector<4x256xf32>
      tpu.vector_store %arg9[%c0_29, %c0_30], %31 {strides = array<i32>} : memref<4x256xf32, #tpu.memory_space<vmem>>, vector<4x256xf32>,
    } else {
    }
    %c0 = arith.constant 0 : index
    %c0_1 = arith.constant 0 : index
    %c0_2 = arith.constant 0 : index
    %3 = vector.load %arg2[%c0, %c0_1, %c0_2] : memref<1x4x256xf32, #tpu.memory_space<vmem>>, vector<1x4x256xf32>
    %4 = vector.shape_cast %3 : vector<1x4x256xf32> to vector<4x256xf32>
    %c0_3 = arith.constant 0 : index
    %c0_4 = arith.constant 0 : index
    %c0_5 = arith.constant 0 : index
    %5 = vector.load %arg3[%c0_3, %c0_4, %c0_5] : memref<1x4x256xf32, #tpu.memory_space<vmem>>, vector<1x4x256xf32>
    %6 = vector.shape_cast %5 : vector<1x4x256xf32> to vector<4x256xf32>
    %cst = arith.constant 0.000000e+00 : f32
    %7 = vector.broadcast %cst : f32 to vector<4x256xf32>
    %8 = arith.subf %7, %4 : vector<4x256xf32>
    %9 = math.exp %8 : vector<4x256xf32>
    %cst_6 = arith.constant 1.000000e+00 : f32
    %10 = vector.broadcast %cst_6 : f32 to vector<4x256xf32>
    %11 = arith.addf %10, %9 : vector<4x256xf32>
    %cst_7 = arith.constant 1.000000e+00 : f32
    %12 = vector.broadcast %cst_7 : f32 to vector<4x256xf32>
    %13 = arith.divf %12, %11 : vector<4x256xf32>
    %c0_8 = arith.constant 0 : index
    %c0_9 = arith.constant 0 : index
    %14 = vector.load %arg7[%c0_8, %c0_9] : memref<4x256xf32, #tpu.memory_space<vmem>>, vector<4x256xf32>
    %15 = arith.mulf %13, %6 : vector<4x256xf32>
    %16 = arith.addf %14, %15 : vector<4x256xf32>
    %c0_10 = arith.constant 0 : index
    %c0_11 = arith.constant 0 : index
    %17 = vector.load %arg7[%c0_10, %c0_11] : memref<4x256xf32, #tpu.memory_space<vmem>>, vector<4x256xf32>
    tpu.vector_store %arg7[%c0_10, %c0_11], %16 {strides = array<i32>} : memref<4x256xf32, #tpu.memory_space<vmem>>, vector<4x256xf32>,
    %c0_12 = arith.constant 0 : index
    %c0_13 = arith.constant 0 : index
    %18 = vector.load %arg8[%c0_12, %c0_13] : memref<4x256xf32, #tpu.memory_space<vmem>>, vector<4x256xf32>
    %19 = arith.addf %18, %13 : vector<4x256xf32>
    %c0_14 = arith.constant 0 : index
    %c0_15 = arith.constant 0 : index
    %20 = vector.load %arg8[%c0_14, %c0_15] : memref<4x256xf32, #tpu.memory_space<vmem>>, vector<4x256xf32>
    tpu.vector_store %arg8[%c0_14, %c0_15], %19 {strides = array<i32>} : memref<4x256xf32, #tpu.memory_space<vmem>>, vector<4x256xf32>,
    %c0_16 = arith.constant 0 : index
    %c0_17 = arith.constant 0 : index
    %21 = vector.load %arg9[%c0_16, %c0_17] : memref<4x256xf32, #tpu.memory_space<vmem>>, vector<4x256xf32>
    %22 = arith.addf %21, %6 : vector<4x256xf32>
    %c0_18 = arith.constant 0 : index
    %c0_19 = arith.constant 0 : index
    %23 = vector.load %arg9[%c0_18, %c0_19] : memref<4x256xf32, #tpu.memory_space<vmem>>, vector<4x256xf32>
    tpu.vector_store %arg9[%c0_18, %c0_19], %22 {strides = array<i32>} : memref<4x256xf32, #tpu.memory_space<vmem>>, vector<4x256xf32>,
    %c0_i32_20 = arith.constant 0 : i32
    %24 = arith.cmpi eq, %arg1, %c0_i32_20 : i32
    %25 = arith.extui %24 : i1 to i32
    %c0_i32_21 = arith.constant 0 : i32
    %26 = arith.cmpi ne, %25, %c0_i32_21 : i32
    scf.if %26 {
      %c0_22 = arith.constant 0 : index
      %c0_23 = arith.constant 0 : index
      %27 = vector.load %arg7[%c0_22, %c0_23] : memref<4x256xf32, #tpu.memory_space<vmem>>, vector<4x256xf32>
      %cst_24 = arith.constant dense<0.000000e+00> : vector<256xf32>
      %28 = vector.multi_reduction <add>, %27, %cst_24 [0] : vector<4x256xf32> to vector<256xf32>
      %29 = vector.shape_cast %28 : vector<256xf32> to vector<1x256xf32>
      %cst_25 = arith.constant dense<0.000000e+00> : vector<1xf32>
      %30 = vector.multi_reduction <add>, %29, %cst_25 [1] : vector<1x256xf32> to vector<1xf32>
      %31 = vector.shape_cast %30 : vector<1xf32> to vector<1x1xf32>
      %32 = vector.shape_cast %31 : vector<1x1xf32> to vector<1x1xf32>
      %33 = vector.broadcast %32 : vector<1x1xf32> to vector<1x128xf32>
      %c0_26 = arith.constant 0 : index
      %c0_27 = arith.constant 0 : index
      %c0_28 = arith.constant 0 : index
      %34 = vector.load %arg4[%c0_26, %c0_27, %c0_28] : memref<1x1x128xf32, #tpu.memory_space<vmem>>, vector<1x1x128xf32>
      %35 = vector.shape_cast %34 : vector<1x1x128xf32> to vector<1x128xf32>
      %36 = vector.shape_cast %33 : vector<1x128xf32> to vector<1x1x128xf32>
      tpu.vector_store %arg4[%c0_26, %c0_27, %c0_28], %36 {strides = array<i32>} : memref<1x1x128xf32, #tpu.memory_space<vmem>>, vector<1x1x128xf32>,
      %c0_29 = arith.constant 0 : index
      %c0_30 = arith.constant 0 : index
      %37 = vector.load %arg8[%c0_29, %c0_30] : memref<4x256xf32, #tpu.memory_space<vmem>>, vector<4x256xf32>
      %cst_31 = arith.constant dense<0.000000e+00> : vector<256xf32>
      %38 = vector.multi_reduction <add>, %37, %cst_31 [0] : vector<4x256xf32> to vector<256xf32>
      %39 = vector.shape_cast %38 : vector<256xf32> to vector<1x256xf32>
      %cst_32 = arith.constant dense<0.000000e+00> : vector<1xf32>
      %40 = vector.multi_reduction <add>, %39, %cst_32 [1] : vector<1x256xf32> to vector<1xf32>
      %41 = vector.shape_cast %40 : vector<1xf32> to vector<1x1xf32>
      %42 = vector.shape_cast %41 : vector<1x1xf32> to vector<1x1xf32>
      %43 = vector.broadcast %42 : vector<1x1xf32> to vector<1x128xf32>
      %c0_33 = arith.constant 0 : index
      %c0_34 = arith.constant 0 : index
      %c0_35 = arith.constant 0 : index
      %44 = vector.load %arg5[%c0_33, %c0_34, %c0_35] : memref<1x1x128xf32, #tpu.memory_space<vmem>>, vector<1x1x128xf32>
      %45 = vector.shape_cast %44 : vector<1x1x128xf32> to vector<1x128xf32>
      %46 = vector.shape_cast %43 : vector<1x128xf32> to vector<1x1x128xf32>
      tpu.vector_store %arg5[%c0_33, %c0_34, %c0_35], %46 {strides = array<i32>} : memref<1x1x128xf32, #tpu.memory_space<vmem>>, vector<1x1x128xf32>,
      %c0_36 = arith.constant 0 : index
      %c0_37 = arith.constant 0 : index
      %47 = vector.load %arg9[%c0_36, %c0_37] : memref<4x256xf32, #tpu.memory_space<vmem>>, vector<4x256xf32>
      %cst_38 = arith.constant dense<0.000000e+00> : vector<256xf32>
      %48 = vector.multi_reduction <add>, %47, %cst_38 [0] : vector<4x256xf32> to vector<256xf32>
      %49 = vector.shape_cast %48 : vector<256xf32> to vector<1x256xf32>
      %cst_39 = arith.constant dense<0.000000e+00> : vector<1xf32>
      %50 = vector.multi_reduction <add>, %49, %cst_39 [1] : vector<1x256xf32> to vector<1xf32>
      %51 = vector.shape_cast %50 : vector<1xf32> to vector<1x1xf32>
      %52 = vector.shape_cast %51 : vector<1x1xf32> to vector<1x1xf32>
      %53 = vector.broadcast %52 : vector<1x1xf32> to vector<1x128xf32>
      %c0_40 = arith.constant 0 : index
      %c0_41 = arith.constant 0 : index
      %c0_42 = arith.constant 0 : index
      %54 = vector.load %arg6[%c0_40, %c0_41, %c0_42] : memref<1x1x128xf32, #tpu.memory_space<vmem>>, vector<1x1x128xf32>
      %55 = vector.shape_cast %54 : vector<1x1x128xf32> to vector<1x128xf32>
      %56 = vector.shape_cast %53 : vector<1x128xf32> to vector<1x1x128xf32>
      tpu.vector_store %arg6[%c0_40, %c0_41, %c0_42], %56 {strides = array<i32>} : memref<1x1x128xf32, #tpu.memory_space<vmem>>, vector<1x1x128xf32>,
    } else {
    }
    return
  }
  func.func @transform_0(%arg0: i32, %arg1: i32) -> (i32, i32, i32) {
    %c0_i32 = arith.constant 0 : i32
    %c0_i32_0 = arith.constant 0 : i32
    return %arg0, %c0_i32, %arg1 : i32, i32, i32
  }
  func.func @transform_1(%arg0: i32, %arg1: i32) -> (i32, i32, i32) {
    %c0_i32 = arith.constant 0 : i32
    %c0_i32_0 = arith.constant 0 : i32
    return %arg0, %c0_i32, %arg1 : i32, i32, i32
  }
  func.func @transform_2(%arg0: i32, %arg1: i32) -> (i32, i32, i32) {
    %c0_i32 = arith.constant 0 : i32
    %c0_i32_0 = arith.constant 0 : i32
    %c0_i32_1 = arith.constant 0 : i32
    return %arg0, %c0_i32, %c0_i32_0 : i32, i32, i32
  }
  func.func @transform_3(%arg0: i32, %arg1: i32) -> (i32, i32, i32) {
    %c0_i32 = arith.constant 0 : i32
    %c0_i32_0 = arith.constant 0 : i32
    %c0_i32_1 = arith.constant 0 : i32
    return %arg0, %c0_i32, %c0_i32_0 : i32, i32, i32
  }
  func.func @transform_4(%arg0: i32, %arg1: i32) -> (i32, i32, i32) {
    %c0_i32 = arith.constant 0 : i32
    %c0_i32_0 = arith.constant 0 : i32
    %c0_i32_1 = arith.constant 0 : i32
    return %arg0, %c0_i32, %c0_i32_0 : i32, i32, i32
  }
}

</mosaic_0001>

<bundles_post_ra>
// kernel: tpu_custom_call.1
= control target key start
LH: loop header
LB: loop body
LE: loop exit
PB: predicated region body
PF: predicated region fallthrough
CT: control target
= control target key end

     0   :  { %s1170_s0 = inlined_call_operand.hbm [shape: f32[2,4,256], index: 0, kind: input, shape index: {}]   ;;  %s1171_s1 = inlined_call_operand.hbm [shape: f32[2,4,256], index: 1, kind: input, shape index: {}]   ;;  %s1172_s2 = inlined_call_operand.hbm [shape: f32[2,1,128], index: 2, kind: output, shape index: {0}]   ;;  %s1173_s3 = inlined_call_operand.hbm [shape: f32[2,1,128], index: 3, kind: output, shape index: {1}]   ;;  %s1174_s4 = inlined_call_operand.hbm [shape: f32[2,1,128], index: 4, kind: output, shape index: {2}]  }
   0x1   :  { %1177 = sst [smem:[#allocation18_spill]] %s1170_s0 }
   0x2   :  { %1178 = sst [smem:[#allocation19_spill]] %s1171_s1 }
   0x3   :  { %10 = vsyncpa [#allocation6], 0 }
   0x4   :  { %12 = vsyncpa [#allocation6 + $0x1], 0 }
   0x5   :  { %13 = vsyncpa [#allocation9], 0 }
   0x6   :  { %15 = vsyncpa [#allocation9 + $0x1], 0 }
   0x7   :  { %16 = vsyncpa [#allocation7], 0 }
   0x8   :  { %18 = vsyncpa [#allocation7 + $0x1], 0 }
   0x9   :  { %19 = vsyncpa [#allocation12], 0 }
   0xa   :  { %21 = vsyncpa [#allocation12 + $0x1], 0  ;;  %s917_s15 = smov 0   ;;  %s919_s16 = smov 0  }
   0xb   :  { %s921_s17 = smov 0   ;;  %s923_s18 = smov 0  }
   0xc   :  { %s925_s19 = smov 0   ;;  %s927_s20 = smov 0  }
   0xd LB: > { %s948_s21 = sadd.s32 4294967295, %s885_s20   ;;  %s1175_s22 = sadd.s32 4294967294, %s885_s20   ;;  %s885_s20 = sphi %s927_s20, %s27_s20   ;;  %s881_s19 = sphi %s925_s19, %s1194_s19   ;;  %s877_s18 = sphi %s923_s18, %s1193_s18   ;;  %s873_s17 = sphi %s921_s17, %s1192_s17   ;;  %s869_s16 = sphi %s919_s16, %s1191_s16   ;;  %s865_s15 = sphi %s917_s15, %s1190_s15  }
   0xe   : > { %s39_s23 = sadd.s32 1, %s881_s19  ;;  %s48_s24 = sadd.s32 1, %s873_s17 }
   0xf   : > { %p41_p0 = scmp.ge.s32.totalorder %s39_s23, 2  ;;  %p55_p1 = scmp.ne.s32.totalorder %s873_s17, %s869_s16 }
  0x10   : > { %p56_p2 = scmp.eq.s32.totalorder %s885_s20, 0  ;;  %p61_p3 = scmp.ne.s32.totalorder %s869_s16, %s865_s15 }
  0x11   : > { %s1196_s23 = smov (%p41_p0, %s39_s23), 0  ;;  %p62_p5 = scmp.eq.s32.totalorder %s948_s21, 0 }
  0x12   : > { %p960_p4 = por %p56_p2, %p55_p1  ;;  %s43_s26 = ssub.s32 %s881_s19, %s1196_s23 }
  0x13   : > { %p113_p6 = scmp.eq.s32.totalorder %s948_s21, 1  ;;  %p46_p7 = scmp.eq.s32.totalorder %s43_s26, 0 }
  0x14   : > { %p968_p8 = por %p62_p5, %p61_p3  ;;  %p119_p10 = scmp.eq.s32.totalorder %s1175_s22, 1 }
  0x15   : > { %p972_p9 = por %p113_p6, %p55_p1  ;;  %p634_p13 = scmp.lt.s32.totalorder %s885_s20, 2 }
  0x16   : > { %s979_s29 = scalar_select %p46_p7, %s873_s17, %s48_s24  }
  0x17   : > { %p981_p11 = por %p119_p10, %p61_p3  ;;  %s988_s5 = sand.u32 1, %s873_s17  }
  0x18   : > { %s591_s6 = sshll.u32 %s988_s5, 3  ;;  %s605_s7 = sshll.u32 %s881_s19, 7 }
  0x19   : > { %s1183_s0 = sld [smem:[#allocation18_spill]]  ;;  %s195_s11 = scalar_lea.vmem [#allocation5], %s591_s6 }
  0x1a   : > { %s205_s12 = sshll.u32 %s195_s11, 4  ;;  %p997_p0 = pnand %p634_p13, %p960_p4  ;;  %s206_s12 = int_to_ptr.vmem [resolvable:$true] %s205_s12 }
  0x1b   : > { %p597_p1 = scmp.ge.s32.totalorder %s885_s20, 1  ;;  %p231_p2 = scmp.lt.s32.totalorder %s885_s20, 3 }
  0x1c   : > { %s192_s14 = scalar_lea.sflag [#allocation6], %s988_s5  ;;  %p691_p3 = pneg %p997_p0 }
  0x1d   : > { %s702_s24 = scalar_lea.vmem %s206_s12, 128  ;;  %s887_s26 = smov [#allocation5]  }
  0x1e   : > { %p703_p5 = scmp.ne.s32.totalorder %s206_s12, %s702_s24  ;;  %s707_s8 = sshll.u32 %s887_s26, 4  ;;  %s708_s8 = int_to_ptr.vmem [resolvable:$false] %s707_s8 }
  0x1f   : > { %s203_s10 = scalar_lea.hbm %s1183_s0, %s605_s7  ;;  %s709_s25 = scalar_lea.vmem %s708_s8, 256 }
  0x20   : > { %p705_p6 = pnand %p703_p5, %p691_p3  ;;  %p710_p4 = scmp.lt.s32.totalorder %s206_s12, %s708_s8 }
  0x21   : > { %p711_p10 = scmp.lt.s32.totalorder %s709_s25, %s702_s24 }
  0x22   : > { %p706_p7 = pneg %p705_p6 }
  0x23   : > { %p712_p13 = por %p711_p10, %p710_p4 }
  0x25   : > { %p713_p12 = pnand %p712_p13, %p706_p7 }
  0x27   : > { %716 = shalt.err (!%p713_p12)
}
  0x28   : > { %620 = dma.hbm_to_vmem [thread:$0]  (!%p997_p0), %s203_s10, 128, %s206_s12, %s192_s14  }
  0x29   : > { %p1015_p5 = pnand %p597_p1, %p231_p2  ;;  %s1186_s1 = sld [smem:[#allocation19_spill]] }
  0x2a   : > { %s216_s8 = scalar_lea.vmem [#allocation8], %s591_s6  ;;  %s213_s22 = scalar_lea.sflag [#allocation9], %s988_s5 }
  0x2b   : > { %s226_s25 = sshll.u32 %s216_s8, 4  ;;  %s888_s10 = smov [#allocation8]   ;;  %s227_s25 = int_to_ptr.vmem [resolvable:$true] %s226_s25 }
  0x2c   : > { %s730_s0 = scalar_lea.vmem %s227_s25, 128  ;;  %s735_s12 = sshll.u32 %s888_s10, 4  ;;  %s736_s12 = int_to_ptr.vmem [resolvable:$false] %s735_s12 }
  0x2d   : > { %p731_p12 = scmp.ne.s32.totalorder %s227_s25, %s730_s0  ;;  %s737_s14 = scalar_lea.vmem %s736_s12, 256 }
  0x2e   : > { %p738_p1 = scmp.lt.s32.totalorder %s227_s25, %s736_s12  ;;  %p739_p2 = scmp.lt.s32.totalorder %s737_s14, %s730_s0 }
  0x2f   : > { %s224_s24 = scalar_lea.hbm %s1186_s1, %s605_s7  ;;  %p733_p6 = pnand %p731_p12, %p691_p3 }
  0x30   : > { %p740_p4 = por %p739_p2, %p738_p1 }
  0x31   : > { %p734_p7 = pneg %p733_p6 }
  0x33   : > { %p741_p10 = pnand %p740_p4, %p734_p7 }
  0x35   : > { %744 = shalt.err (!%p741_p10)
}
  0x36   : > { %623 = dma.hbm_to_vmem [thread:$0]  (!%p997_p0), %s224_s24, 128, %s227_s25, %s213_s22  }
  0x37   : > { %235 = sbr.rel (%p1015_p5) target bundleno = 309 (0x135), region = 28  ;;  %s1031_s5 = sand.u32 (!%p1015_p5), 1, %s869_s16  }
  0x38   : > { %s598_s6 = sshll.u32 (!%p1015_p5), %s1031_s5, 3  ;;  %s238_s7 = scalar_lea.sflag (!%p1015_p5), [#allocation6], %s1031_s5 }
  0x39   : > { %s241_s11 = scalar_lea.vmem (!%p1015_p5), [#allocation5], %s598_s6 }
  0x3c   : > { %848 = dma.done.wait (%p968_p8), %s238_s7, 128  }
  0x3d   : > { %850 = vsyncadd (%p968_p8), %s238_s7, 4294967168  ;;  %s247_s0 = scalar_lea.sflag [#allocation9], %s1031_s5  ;;  %s250_s22 = scalar_lea.vmem [#allocation8], %s598_s6 }
  0x3e   : > { %852 = dma.done.wait (%p968_p8), %s247_s0, 128  }
  0x3f   : > { %854 = vsyncadd (%p968_p8), %s247_s0, 4294967168  ;;  %v296_v0 = vld [vmem:[%s241_s11] sm:$0xff]  ;;  %vm321_vm0 = vcmask 1043456   ;;  %v297_v1 = vld [vmem:[%s250_s22] sm:$0xff]  ;;  %s286_s27 = scalar_lea.vmem [#allocation13], %s1031_s5  ;;  %s280_s13 = scalar_lea.vmem [#allocation11], %s1031_s5 }
  0x40   : > { %v298_v2 = vsub.f32 0.0, %v296_v0  ;;  %v364_v3 = vcombine.high %v297_v1, %v297_v1  ;;  %v366_v4 = vsel %vm321_vm0, %v297_v1, 0.0  ;;  %s418_s9 = sshll.u32 %s280_s13, 4  ;;  %s431_s26 = sshll.u32 %s286_s27, 4  ;;  %s1057_s9 = int_to_ptr.vmem [resolvable:$true] %s418_s9  ;;  %s1059_s26 = int_to_ptr.vmem [resolvable:$true] %s431_s26 }
  0x41   : > { %v367_v5 = vrot.slane %v366_v4, 4  ;;  %s388_s24 = sand.u32 1, %s948_s21   ;;  %s600_s8 = sshll.u32 %s877_s18, 4 }
  0x42   : > { %v299_v6 = vmul.f32 1.442695, %v298_v2  ;;  %v373_v7 = vsel %vm321_vm0, %v364_v3, 0.0  ;;  %s1176_s25 = scalar_lea.vmem [#allocation10], %s1031_s5  ;;  %s1064_s6 = scalar_lea.hbm %s1173_s3, %s600_s8 }
  0x43   : > { %v368_v8 = vadd.f32 %v367_v5, %v366_v4  ;;  %v374_v9 = vrot.slane %v373_v7, 4  ;;  %s405_s10 = sshll.u32 %s1176_s25, 4  ;;  %s1071_s7 = scalar_lea.hbm %s1174_s4, %s600_s8  ;;  %s1066_s10 = int_to_ptr.vmem [resolvable:$true] %s405_s10 }
  0x44   : > { %685 = vpow2.f32 %v299_v6  ;;  %s1076_s22 = scalar_lea.hbm %s1172_s2, %s600_s8  ;;  %s745_s12 = scalar_lea.vmem %s1057_s9, 16 }
  0x45   : > { %v369_v10 = vrot.slane %v368_v8, 2  ;;  %v375_v11 = vadd.f32 %v374_v9, %v373_v7  ;;  %p746_p8 = scmp.ne.s32.totalorder %s1057_s9, %s745_s12  ;;  %s889_s14 = smov [#allocation11]  }
  0x46   : > { %s749_s25 = sshll.u32 %s889_s14, 4  ;;  %s750_s25 = int_to_ptr.vmem [resolvable:$false] %s749_s25 }
  0x47   : > { %v370_v12 = vadd.f32 %v369_v10, %v368_v8  ;;  %v376_v13 = vrot.slane %v375_v11, 2  ;;  %p747_p0 = pnand %p746_p8, %p972_p9  ;;  %s751_s1 = scalar_lea.vmem %s750_s25, 32 }
  0x48   : > { %p752_p13 = scmp.lt.s32.totalorder %s1057_s9, %s750_s25  ;;  %p753_p5 = scmp.lt.s32.totalorder %s751_s1, %s745_s12 }
  0x49   : > { %v371_v14 = vrot.slane %v370_v12, 1  ;;  %v377_v15 = vadd.f32 %v376_v13, %v375_v11  ;;  %p748_p3 = pneg %p747_p0 }
  0x4a   : > { %p754_p12 = por %p753_p5, %p752_p13 }
  0x4b   : > { %v372_v16 = vadd.f32 %v371_v14, %v370_v12  ;;  %v378_v17 = vrot.slane %v377_v15, 1 }
  0x4c   : > { %p755_p6 = pnand %p754_p12, %p748_p3 }
  0x4d   : > { %v379_v18 = vadd.f32 %v378_v17, %v377_v15 }
  0x4f   : > { %v380_v19 = vadd.f32 %v379_v18, %v372_v16 }
  0x51   : > { %v686_v20 = vpop.eup %685  ;;  %381 = vadd.xlane.f32.xlu1 %v380_v19 }
  0x52   : > { %v301_v21 = vadd.f32 1.0, %v686_v20 }
  0x54   : > { %687 = vrcp.f32 %v301_v21 }
  0x61   : > { %v688_v22 = vpop.eup %687 }
  0x62   : > { %v342_v23 = vcombine.high %v688_v22, %v688_v22  ;;  %v344_v24 = vsel %vm321_vm0, %v688_v22, 0.0  ;;  %v305_v25 = vmul.f32 %v688_v22, %v297_v1 }
  0x63   : > { %v345_v26 = vrot.slane %v344_v24, 4 }
  0x64   : > { %v351_v27 = vsel %vm321_vm0, %v342_v23, 0.0  ;;  %v319_v28 = vcombine.high %v305_v25, %v305_v25  ;;  %v322_v29 = vsel %vm321_vm0, %v305_v25, 0.0 }
  0x65   : > { %v346_v30 = vadd.f32 %v345_v26, %v344_v24  ;;  %v352_v31 = vrot.slane %v351_v27, 4  ;;  %v323_v32 = vrot.slane %v322_v29, 4 }
  0x66   : > { %v329_v33 = vsel %vm321_vm0, %v319_v28, 0.0 }
  0x67   : > { %v347_v34 = vrot.slane %v346_v30, 2  ;;  %v353_v35 = vadd.f32 %v352_v31, %v351_v27  ;;  %v324_v36 = vadd.f32 %v323_v32, %v322_v29  ;;  %v330_v37 = vrot.slane %v329_v33, 4 }
  0x69   : > { %v348_v38 = vadd.f32 %v347_v34, %v346_v30  ;;  %v354_v39 = vrot.slane %v353_v35, 2  ;;  %v325_v40 = vrot.slane %v324_v36, 2  ;;  %v331_v41 = vadd.f32 %v330_v37, %v329_v33 }
  0x6b   : > { %v349_v42 = vrot.slane %v348_v38, 1  ;;  %v355_v43 = vadd.f32 %v354_v39, %v353_v35  ;;  %v326_v44 = vadd.f32 %v325_v40, %v324_v36  ;;  %v332_v45 = vrot.slane %v331_v41, 2 }
  0x6d   : > { %v350_v46 = vadd.f32 %v349_v42, %v348_v38  ;;  %v356_v47 = vrot.slane %v355_v43, 1  ;;  %v327_v48 = vrot.slane %v326_v44, 1  ;;  %v333_v49 = vadd.f32 %v332_v45, %v331_v41 }
  0x6f   : > { %v357_v50 = vadd.f32 %v356_v47, %v355_v43  ;;  %v328_v51 = vadd.f32 %v327_v48, %v326_v44  ;;  %v334_v52 = vrot.slane %v333_v49, 1 }
  0x71   : > { %v358_v53 = vadd.f32 %v357_v50, %v350_v46  ;;  %v335_v54 = vadd.f32 %v334_v52, %v333_v49 }
  0x73   : > { %359 = vadd.xlane.f32.xlu0 %v358_v53  ;;  %v336_v55 = vadd.f32 %v335_v54, %v328_v51 }
  0x77   : > { %337 = vadd.xlane.f32.xlu0 %v336_v55 }
  0xda   : > { %v382_v56 = vpop.xlane.xlu1 %381 }
  0xdb   : > { %383 = vst [vmem:[%s286_s27] sm:$0x1] %v382_v56  ;;  %s1078_s27 = scalar_lea.sflag [#allocation12], %s388_s24 }
  0xfc   : > { %v360_v57 = vpop.xlane.xlu0 %359 }
  0xfd   : > { %361 = vst [vmem:[%s280_s13] sm:$0x1] %v360_v57 }
  0xfe   : > { %758 = shalt.err (!%p755_p6)
}
  0xff   : > { %s759_s13 = scalar_lea.hbm %s1064_s6, 16  ;;  %s763_s21 = scalar_lea.hbm %s1173_s3, 32 }
 0x100   : > { %p760_p7 = scmp.ne.s32.totalorder %s1064_s6, %s759_s13  ;;  %p764_p4 = scmp.lt.s32.totalorder %s1064_s6, %s1173_s3 }
 0x101   : > { %p765_p10 = scmp.lt.s32.totalorder %s763_s21, %s759_s13 }
 0x102   : > { %p761_p1 = pnand %p760_p7, %p972_p9 }
 0x103   : > { %p766_p8 = por %p765_p10, %p764_p4 }
 0x104   : > { %p762_p2 = pneg %p761_p1 }
 0x106   : > { %p767_p0 = pnand %p766_p8, %p762_p2 }
 0x108   : > { %770 = shalt.err (!%p767_p0)
}
 0x109   : > { %612 = dma.vmem_to_hbm [thread:$0]  (%p972_p9), %s1057_s9, 16, %s1064_s6, %s1078_s27  }
 0x10a   : > { %s771_s1 = scalar_lea.vmem %s1059_s26, 16  ;;  %s890_s25 = smov [#allocation13]  }
 0x10b   : > { %p772_p3 = scmp.ne.s32.totalorder %s1059_s26, %s771_s1  ;;  %s775_s0 = sshll.u32 %s890_s25, 4  ;;  %s776_s0 = int_to_ptr.vmem [resolvable:$false] %s775_s0 }
 0x10c   : > { %s777_s12 = scalar_lea.vmem %s776_s0, 32  ;;  %p778_p12 = scmp.lt.s32.totalorder %s1059_s26, %s776_s0 }
 0x10d   : > { %p773_p13 = pnand %p772_p3, %p972_p9  ;;  %p779_p6 = scmp.lt.s32.totalorder %s777_s12, %s771_s1 }
 0x10f   : > { %p774_p5 = pneg %p773_p13  ;;  %p780_p7 = por %p779_p6, %p778_p12 }
 0x111   : > { %p781_p1 = pnand %p780_p7, %p774_p5 }
 0x113   : > { %784 = shalt.err (!%p781_p1)
}
 0x114   : > { %s785_s14 = scalar_lea.hbm %s1071_s7, 16  ;;  %s789_s13 = scalar_lea.hbm %s1174_s4, 32 }
 0x115   : > { %p786_p2 = scmp.ne.s32.totalorder %s1071_s7, %s785_s14  ;;  %p790_p8 = scmp.lt.s32.totalorder %s1071_s7, %s1174_s4 }
 0x116   : > { %p791_p0 = scmp.lt.s32.totalorder %s789_s13, %s785_s14 }
 0x117   : > { %p787_p4 = pnand %p786_p2, %p972_p9 }
 0x118   : > { %p792_p3 = por %p791_p0, %p790_p8 }
 0x119   : > { %p788_p10 = pneg %p787_p4 }
 0x11b   : > { %p793_p13 = pnand %p792_p3, %p788_p10 }
 0x11d   : > { %796 = shalt.err (!%p793_p13)
}
 0x11e   : > { %613 = dma.vmem_to_hbm [thread:$0]  (%p972_p9), %s1059_s26, 16, %s1071_s7, %s1078_s27   ;;  %v338_v58 = vpop.xlane.xlu0 %337 }
 0x11f   : > { %s1187_s21 = scalar_lea.vmem [#allocation10], %s1031_s5  ;;  %s385_s18 = scalar_lea.sflag [#allocation7], %s1031_s5 }
 0x120   : > { %339 = vst [vmem:[%s1187_s21] sm:$0x1] %v338_v58  ;;  %s797_s11 = scalar_lea.vmem %s1066_s10, 16  ;;  %s891_s1 = smov [#allocation10]  }
 0x121   : > { %p798_p5 = scmp.ne.s32.totalorder %s1066_s10, %s797_s11  ;;  %s801_s25 = sshll.u32 %s891_s1, 4  ;;  %s802_s25 = int_to_ptr.vmem [resolvable:$false] %s801_s25 }
 0x122   : > { %s803_s0 = scalar_lea.vmem %s802_s25, 32  ;;  %p804_p7 = scmp.lt.s32.totalorder %s1066_s10, %s802_s25 }
 0x123   : > { %p799_p12 = pnand %p798_p5, %p972_p9  ;;  %p805_p1 = scmp.lt.s32.totalorder %s803_s0, %s797_s11 }
 0x125   : > { %p800_p6 = pneg %p799_p12  ;;  %p806_p2 = por %p805_p1, %p804_p7 }
 0x127   : > { %p807_p4 = pnand %p806_p2, %p800_p6 }
 0x129   : > { %810 = shalt.err (!%p807_p4)
}
 0x12a   : > { %s811_s26 = scalar_lea.hbm %s1076_s22, 16  ;;  %s815_s27 = scalar_lea.hbm %s1172_s2, 32 }
 0x12b   : > { %p812_p10 = scmp.ne.s32.totalorder %s1076_s22, %s811_s26  ;;  %p816_p3 = scmp.lt.s32.totalorder %s1076_s22, %s1172_s2 }
 0x12c   : > { %p817_p13 = scmp.lt.s32.totalorder %s815_s27, %s811_s26 }
 0x12d   : > { %p813_p8 = pnand %p812_p10, %p972_p9 }
 0x12e   : > { %p818_p5 = por %p817_p13, %p816_p3 }
 0x12f   : > { %p814_p0 = pneg %p813_p8 }
 0x131   : > { %p819_p12 = pnand %p818_p5, %p814_p0 }
 0x133   : > { %822 = shalt.err (!%p819_p12)
}
 0x134   : > { %611 = dma.vmem_to_hbm [thread:$0]  (%p972_p9), %s1066_s10, 16, %s1076_s22, %s385_s18  }
 0x135 PF: > { %s443_s9 = sand.u32 1, %s865_s15   ;;  %p1188_p6 = scmp.ge.s32.totalorder %s885_s20, 2 }
 0x136   : > { %s444_s6 = scalar_lea.sflag [#allocation7], %s443_s9 }
 0x137   : > { %p625_p7 = pnand %p1188_p6, %p981_p11 }
 0x139   : > { %p626_p1 = pneg %p625_p7 }
 0x13b   : > { %856 = dma.done.wait (%p626_p1), %s444_s6, 16  }
 0x13c   : > { %858 = vsyncadd (%p626_p1), %s444_s6, 4294967280  ;;  %s1189_s13 = sadd.s32 4294967294, %s885_s20  }
 0x13d   : > { %s451_s24 = sand.u32 1, %s1189_s13  }
 0x13e   : > { %s452_s8 = scalar_lea.sflag [#allocation12], %s451_s24 }
 0x13f   : > { %860 = dma.done.wait (%p626_p1), %s452_s8, 32  }
 0x140   : > { %862 = vsyncadd (%p626_p1), %s452_s8, 4294967264  ;;  %s27_s20 = sadd.s32 1, %s885_s20   ;;  %s1190_s15 = smov %s869_s16 }
 0x141   : > { %p24_p9 = scmp.ge.s32.totalorder %s27_s20, 4   ;;  %s1191_s16 = smov %s873_s17 }
 0x142   : > { %s1192_s17 = smov %s979_s29  ;;  %s1193_s18 = smov %s881_s19 }
 0x143   : > { %s1194_s19 = smov %s1196_s23  ;;  %26 = sbr.rel (!%p24_p9) target bundleno = 13 (0xd), region = 126 }
 0x148   :  { %464 = vsyncpa [#allocation6], 1 }
 0x149   :  { %466 = vsyncpa [#allocation6 + $0x1], 1 }
 0x14a   :  { %467 = vsyncpa [#allocation9], 1 }
 0x14b   :  { %469 = vsyncpa [#allocation9 + $0x1], 1 }
 0x14c   :  { %470 = vsyncpa [#allocation7], 1 }
 0x14d   :  { %472 = vsyncpa [#allocation7 + $0x1], 1 }
 0x14e   :  { %473 = vsyncpa [#allocation12], 1 }
 0x14f   :  { %475 = vsyncpa [#allocation12 + $0x1], 1 }

</bundles_post_ra>
